<compile_context>
chip_gen: v7x
topology: tpu7x:2x2x1
jax: 0.10.0
libtpu: 0.0.40
codegen_flags: <defaults>
</compile_context>

<pallas_src>
import functools

import jax
import jax.numpy as jnp
from jax import lax
from jax.experimental import pallas as pl
from jax.experimental.pallas import tpu as pltpu
from jax.scipy.special import digamma, gammaln


def _round_up(x, m):
    return ((x + m - 1) // m) * m


# -----------------------------------------------------------------------------
# Fused kernel: per-view MLP + classifier + Softplus + combine_views epilogue
# -----------------------------------------------------------------------------
def _camvf_fused_kernel(*refs, classes, views, exp_eta):
    in_refs = refs[:7 * views]            # per view: x, w1, b1, w2, b2, wc, bc
    ev_ref = refs[7 * views]              # (views, tb, C_pad) f32
    fused_ref = refs[7 * views + 1]       # (tb, C_pad) f32
    _, tb, c_pad = ev_ref.shape
    fclasses = float(classes)

    # Padded-class lane mask, hoisted out of the per-view loop (iota emitted once).
    lane_mask = None
    if c_pad > classes:
        lane = lax.broadcasted_iota(jnp.int32, (tb, c_pad), 1)
        lane_mask = lane < classes

    # ---- per-view encoder MLP + classifier + Softplus (bf16 MXU, f32 accumulate) ----
    # Only (tb, 1) scalars are kept live per view; ev tiles go straight to ev_ref.
    S, sq = [], []
    for v in range(views):
        x_ref, w1_ref, b1_ref, w2_ref, b2_ref, wc_ref, bc_ref = in_refs[7 * v:7 * v + 7]
        h1 = jnp.dot(x_ref[...], w1_ref[...],
                     preferred_element_type=jnp.float32) + b1_ref[...]
        h1 = jnp.maximum(h1, 0.0)
        h2 = jnp.dot(h1.astype(jnp.bfloat16), w2_ref[...],
                     preferred_element_type=jnp.float32) + b2_ref[...]
        h2 = jnp.maximum(h2, 0.0)
        logits = jnp.dot(h2.astype(jnp.bfloat16), wc_ref[...],
                         preferred_element_type=jnp.float32) + bc_ref[...]
        # torch.nn.Softplus(beta=1, threshold=20)
        e = jnp.where(logits > 20.0, logits,
                      jnp.log(1.0 + jnp.exp(jnp.minimum(logits, 20.0))))
        if lane_mask is not None:
            e = jnp.where(lane_mask, e, 0.0)   # exact zeros in padded class lanes
        ev_ref[v] = e
        S.append(jnp.sum(e, axis=-1, keepdims=True) + fclasses)   # sum(alpha) = sum(ev)+C
        sq.append(jnp.sum(e * e, axis=-1, keepdims=True))         # ||ev||^2

    invS = [pl.reciprocal(S[v], approx=True) for v in range(views)]      # EUP
    bnorm2 = [sq[v] * (invS[v] * invS[v]) for v in range(views)]          # ||b_v||^2

    # ---- pairwise Jousselme distances via the norm expansion (symmetry -> i<j only) ----
    d = {}
    for i in range(views):
        ev_i = ev_ref[i]                   # reload one tile; at most two tiles live
        for j in range(i + 1, views):
            dot_ij = jnp.sum(ev_i * ev_ref[j], axis=-1, keepdims=True)
            d2 = bnorm2[i] + bnorm2[j] - 2.0 * dot_ij * (invS[i] * invS[j])
            d[(i, j)] = jnp.sqrt(jnp.maximum(0.5 * d2, 0.0))

    inv_vm1 = 1.0 / float(views - 1)
    dist_avg = []
    for j in range(views):
        acc = None
        for i in range(views):
            if i == j:
                continue                   # d(j, j) == 0
            dij = d[(i, j) if i < j else (j, i)]
            acc = dij if acc is None else acc + dij
        dist_avg.append(acc * inv_vm1)

    global_avg = dist_avg[0]
    for j in range(1, views):
        global_avg = global_avg + dist_avg[j]
    global_avg = global_avg * (1.0 / float(views))

    # ---- uncertainty-based weights (all (tb, 1) scalar math) ----
    u = [fclasses * invS[v] for v in range(views)]
    u_sum = u[0]
    for v in range(1, views):
        u_sum = u_sum + u[v]
    inv_u_sum = pl.reciprocal(u_sum, approx=True)
    wight = [u[v] * inv_u_sum for v in range(views)]
    wmax = wight[0]
    for v in range(1, views):
        wmax = jnp.maximum(wmax, wight[v])

    wn = [jnp.where(dist_avg[v] < global_avg,
                    jnp.exp(-wight[v]),
                    jnp.exp(-((wmax + 1.0) - wight[v]))) for v in range(views)]
    wn_sum = wn[0]
    for v in range(1, views):
        wn_sum = wn_sum + wn[v]
    inv_wn_sum = pl.reciprocal(wn_sum, approx=True)
    wn = [wn[v] * inv_wn_sum for v in range(views)]

    we = [jnp.exp(wn[v] * (1.0 / exp_eta)) for v in range(views)]
    we_sum = we[0]
    for v in range(1, views):
        we_sum = we_sum + we[v]
    we = [we[v] / we_sum for v in range(views)]   # exact divide (scales output directly)
    # (reference's trailing divide by sum(we) == 1 is an exact no-op and is dropped)

    # ---- weighted fuse, reloading one ev tile at a time from VMEM ----
    acc = ev_ref[0] * we[0]
    for v in range(1, views):
        acc = acc + ev_ref[v] * we[v]
    fused_ref[...] = acc


# -----------------------------------------------------------------------------
# Host-side wrapper (called only from jitted entry points)
# -----------------------------------------------------------------------------
def _choose_batch_tile(batch, tb_max):
    if batch <= tb_max:
        tb = _round_up(batch, 16)          # single tile == full padded batch
        return tb, tb
    tb = tb_max
    return tb, _round_up(batch, tb)


def _camvf_fused_call(x_tuple, params_tuple, *, classes, views, exp_eta, tb_max):
    batch = x_tuple[0].shape[0]
    c_pad = params_tuple[0][5].shape[-1]                     # bc: (1, C_pad)
    tb, b_pad = _choose_batch_tile(batch, tb_max)

    operands, in_specs = [], []
    for v in range(views):
        w1, b1, w2, b2, wc, bc = params_tuple[v]
        k_pad = w1.shape[0]                                  # per-view padded K
        xv = x_tuple[v].astype(jnp.bfloat16)
        pad_r, pad_c = b_pad - xv.shape[0], k_pad - xv.shape[1]
        if pad_r or pad_c:
            xv = jnp.pad(xv, ((0, pad_r), (0, pad_c)))
        operands += [xv, w1, b1, w2, b2, wc, bc]
        in_specs += [
            pl.BlockSpec((tb, k_pad), lambda i: (i, 0)),     # batch-tiled x
            # Constant-index weight/bias blocks stay VMEM-resident across batch tiles.
            # TODO(synk): on v7x (64 MiB VMEM) add pipeline_mode=pl.Buffered(1) to these
            # constant-index specs to drop the redundant second pipeline buffer.
            pl.BlockSpec(w1.shape, lambda i: (0, 0)),
            pl.BlockSpec(b1.shape, lambda i: (0, 0)),
            pl.BlockSpec(w2.shape, lambda i: (0, 0)),
            pl.BlockSpec(b2.shape, lambda i: (0, 0)),
            pl.BlockSpec(wc.shape, lambda i: (0, 0)),
            pl.BlockSpec(bc.shape, lambda i: (0, 0)),
        ]

    kernel = functools.partial(_camvf_fused_kernel, classes=int(classes),
                               views=int(views), exp_eta=float(exp_eta))

    ev_pad, fused_pad = pl.pallas_call(
        kernel,
        out_shape=(
            jax.ShapeDtypeStruct((views, b_pad, c_pad), jnp.float32),
            jax.ShapeDtypeStruct((b_pad, c_pad), jnp.float32),
        ),
        grid=(b_pad // tb,),
        in_specs=in_specs,
        out_specs=(
            pl.BlockSpec((views, tb, c_pad), lambda i: (0, i, 0)),
            pl.BlockSpec((tb, c_pad), lambda i: (i, 0)),
        ),
        compiler_params=pltpu.CompilerParams(
            dimension_semantics=("parallel",)),
    )(*operands)

    return ev_pad[:, :batch, :classes], fused_pad[:batch, :classes]


@functools.partial(jax.jit,
                   static_argnames=("classes", "views", "exp_eta", "tb_max"))
def _camvf_infer_jit(x_tuple, params_tuple, *, classes, views, exp_eta, tb_max):
    return _camvf_fused_call(x_tuple, params_tuple, classes=classes, views=views,
                             exp_eta=exp_eta, tb_max=tb_max)


# -----------------------------------------------------------------------------
# Plain-JAX glue: KL / ce_loss (small (B, C) tensors, transcendental-heavy)
# -----------------------------------------------------------------------------
def KL(alpha, c):
    beta = jnp.ones((1, c), dtype=alpha.dtype)
    S_alpha = jnp.sum(alpha, axis=1, keepdims=True)
    S_beta = jnp.sum(beta, axis=1, keepdims=True)
    lnB = gammaln(S_alpha) - jnp.sum(gammaln(alpha), axis=1, keepdims=True)
    lnB_uni = jnp.sum(gammaln(beta), axis=1, keepdims=True) - gammaln(S_beta)
    dg0 = digamma(S_alpha)
    dg1 = digamma(alpha)
    return jnp.sum((alpha - beta) * (dg1 - dg0), axis=1, keepdims=True) + lnB + lnB_uni


def ce_loss(p, alpha, c, global_step, annealing_step):
    S = jnp.sum(alpha, axis=1, keepdims=True)
    E = alpha - 1.0
    label = jax.nn.one_hot(p, num_classes=c, dtype=alpha.dtype)
    A = jnp.mean(jnp.sum(label * (digamma(S) - digamma(alpha)), axis=1, keepdims=True))
    # jnp.minimum so global_step can be a traced value inside jit
    annealing_coef = jnp.minimum(
        1.0, jnp.asarray(global_step, jnp.float32) / float(annealing_step))
    alp = E * (1.0 - label) + 1.0
    B = annealing_coef * KL(alp, c)
    return A + jnp.mean(B)


@functools.partial(jax.jit,
                   static_argnames=("classes", "views", "exp_eta", "beta",
                                    "lambda_epoch", "tb_max"))
def _camvf_forward_jit(x_tuple, y, global_step, params_tuple, *, classes, views,
                       exp_eta, beta, lambda_epoch, tb_max):
    ev_stack, evidence_a = _camvf_fused_call(
        x_tuple, params_tuple, classes=classes, views=views,
        exp_eta=exp_eta, tb_max=tb_max)
    # (reference's `loss = 0; loss *= 1 - beta` is a no-op and is dropped)
    loss = 0.0
    for v in range(views):
        loss = loss + beta * ce_loss(y, ev_stack[v] + 1.0, classes,
                                     global_step, lambda_epoch)
    loss = loss + beta * ce_loss(y, evidence_a + 1.0, classes,
                                 global_step, lambda_epoch)
    return ev_stack, evidence_a, loss


# -----------------------------------------------------------------------------
# CAMVF module (per-view packed parameters + forward orchestration)
# -----------------------------------------------------------------------------
class CAMVF:
    def __init__(self, in_dim, num_classes, alpha, beta, lambda_epoch=50,
                 encode_dim=None, proj_dim=None, exp_eta=0.5, key=None,
                 batch_tile_max=256):
        if proj_dim is None:
            proj_dim = [256, 128]
        if encode_dim is None:
            encode_dim = [256, 512]
        self.views = len(in_dim)
        assert self.views >= 2, "combine_views divides by (views - 1); need >= 2 views"
        self.encode_dim = encode_dim
        self.proj_dim = proj_dim
        self.classes = num_classes
        self.alpha = alpha
        self.beta = beta
        self.lambda_epoch = lambda_epoch
        self.exp_eta = exp_eta
        self.in_dim = in_dim
        # Max batch tile: 256 fills the 2x256-wide MXUs on v6e/v7x and keeps
        # B_pad//tb >= 2 for big batches (both v7x TCs busy); v5e is already
        # saturated at 128 — either value is fine there.
        self.batch_tile_max = batch_tile_max

        if key is None:
            key = jax.random.PRNGKey(0)

        H1, H2 = encode_dim[0], encode_dim[1]
        # Hidden dims padded only to the 16-sublane bf16 granule (real configs 256/512
        # are already MXU-friendly); classes padded to 128 for a lane-dense output.
        H1_pad = _round_up(H1, 16)
        H2_pad = _round_up(H2, 16)
        C_pad = _round_up(num_classes, 128)

        def linear_init(k, fan_in, fan_out):
            kw, kb = jax.random.split(k)
            bound = 1.0 / (float(fan_in) ** 0.5)
            w = jax.random.uniform(kw, (fan_in, fan_out), jnp.float32, -bound, bound)
            b = jax.random.uniform(kb, (fan_out,), jnp.float32, -bound, bound)
            return w, b

        params = []
        for v in range(self.views):
            key, k1, k2, k3 = jax.random.split(key, 4)
            k_pad_v = _round_up(in_dim[v], 16)          # per-view K padding only
            w1, b1 = linear_init(k1, in_dim[v], H1)
            w2, b2 = linear_init(k2, H1, H2)
            wc, bc = linear_init(k3, H2, num_classes)
            # zero padding everywhere keeps the padded lanes/rows numerically inert
            w1 = jnp.pad(w1, ((0, k_pad_v - in_dim[v]), (0, H1_pad - H1)))
            b1 = jnp.pad(b1, ((0, H1_pad - H1),))
            w2 = jnp.pad(w2, ((0, H1_pad - H1), (0, H2_pad - H2)))
            b2 = jnp.pad(b2, ((0, H2_pad - H2),))
            wc = jnp.pad(wc, ((0, H2_pad - H2), (0, C_pad - num_classes)))
            bc = jnp.pad(bc, ((0, C_pad - num_classes),))
            # bf16 weights for the MXU; biases stay f32 (added post f32-accumulated dot)
            params.append((w1.astype(jnp.bfloat16), b1.reshape(1, -1),
                           w2.astype(jnp.bfloat16), b2.reshape(1, -1),
                           wc.astype(jnp.bfloat16), bc.reshape(1, -1)))
        self.params = tuple(params)
        # NOTE: Projection modules exist in the torch module but are never used in forward().

    def infer(self, X):
        x_tuple = tuple(X[v] for v in range(self.views))
        ev_stack, _ = _camvf_infer_jit(
            x_tuple, self.params, classes=self.classes, views=self.views,
            exp_eta=self.exp_eta, tb_max=self.batch_tile_max)
        evidence = {v: ev_stack[v] for v in range(self.views)}
        return evidence, {}

    def forward(self, X, y, global_step, mode="train"):
        assert mode in ["train", "valid", "test"]
        x_tuple = tuple(X[v] for v in range(self.views))
        ev_stack, evidence_a, loss = _camvf_forward_jit(
            x_tuple, y, global_step, self.params,
            classes=self.classes, views=self.views, exp_eta=self.exp_eta,
            beta=self.beta, lambda_epoch=self.lambda_epoch,
            tb_max=self.batch_tile_max)
        evidence = [ev_stack[v] for v in range(self.views)]
        return evidence, evidence_a, loss


# -----------------------------------------------------------------------------
if __name__ == "__main__":
    key = jax.random.PRNGKey(0)
    k_x0, k_x1, k_y, k_params = jax.random.split(key, 4)

    batch = 8
    in_dim = [20, 24]
    encode_dim = [32, 64]
    num_classes = 8
    global_step = 5

    X = {
        0: jax.random.normal(k_x0, (batch, in_dim[0]), jnp.float32),
        1: jax.random.normal(k_x1, (batch, in_dim[1]), jnp.float32),
    }
    y = jax.random.randint(k_y, (batch,), 0, num_classes)

    model = CAMVF(
        in_dim=in_dim,
        num_classes=num_classes,
        alpha=1.0,
        beta=0.5,
        lambda_epoch=50,
        encode_dim=encode_dim,
        proj_dim=[16],
        exp_eta=0.5,
        key=k_params,
    )

    evidence, evidence_a, loss = model.forward(X, y, global_step, mode="train")
    for ev in evidence:
        jax.block_until_ready(ev)
    jax.block_until_ready(evidence_a)
    jax.block_until_ready(loss)

    assert evidence_a.shape == (batch, num_classes)
    assert all(ev.shape == (batch, num_classes) for ev in evidence)
    assert bool(jnp.isfinite(loss))
    assert bool(jnp.all(jnp.isfinite(evidence_a)))
    assert bool(all(jnp.all(jnp.isfinite(ev)) for ev in evidence))
    print("KERNEL_OK")
</pallas_src>

<mosaic_0001>
module attributes {stable_mosaic.version = 11 : i64} {
  func.func @_camvf_fused_kernel(%arg0: i32, %arg1: memref<16x32xbf16, #tpu.memory_space<vmem>>, %arg2: memref<32x32xbf16, #tpu.memory_space<vmem>>, %arg3: memref<1x32xf32, #tpu.memory_space<vmem>>, %arg4: memref<32x64xbf16, #tpu.memory_space<vmem>>, %arg5: memref<1x64xf32, #tpu.memory_space<vmem>>, %arg6: memref<64x128xbf16, #tpu.memory_space<vmem>>, %arg7: memref<1x128xf32, #tpu.memory_space<vmem>>, %arg8: memref<16x32xbf16, #tpu.memory_space<vmem>>, %arg9: memref<32x32xbf16, #tpu.memory_space<vmem>>, %arg10: memref<1x32xf32, #tpu.memory_space<vmem>>, %arg11: memref<32x64xbf16, #tpu.memory_space<vmem>>, %arg12: memref<1x64xf32, #tpu.memory_space<vmem>>, %arg13: memref<64x128xbf16, #tpu.memory_space<vmem>>, %arg14: memref<1x128xf32, #tpu.memory_space<vmem>>, %arg15: memref<2x16x128xf32, #tpu.memory_space<vmem>>, %arg16: memref<16x128xf32, #tpu.memory_space<vmem>>) attributes {dimension_semantics = [#tpu.dimension_semantics<parallel>], iteration_bounds = array<i64: 1>, scalar_prefetch = 0 : i64, scratch_operands = 0 : i64, tpu.core_type = #tpu.core_type<tc>, window_params = [{transform_indices = @transform_0, window_bounds = array<i64: 16, 32>}, {pipeline_mode = #tpu.pipeline_mode<synchronous>, transform_indices = @transform_1, window_bounds = array<i64: 32, 32>}, {pipeline_mode = #tpu.pipeline_mode<synchronous>, transform_indices = @transform_2, window_bounds = array<i64: 1, 32>}, {pipeline_mode = #tpu.pipeline_mode<synchronous>, transform_indices = @transform_3, window_bounds = array<i64: 32, 64>}, {pipeline_mode = #tpu.pipeline_mode<synchronous>, transform_indices = @transform_4, window_bounds = array<i64: 1, 64>}, {pipeline_mode = #tpu.pipeline_mode<synchronous>, transform_indices = @transform_5, window_bounds = array<i64: 64, 128>}, {pipeline_mode = #tpu.pipeline_mode<synchronous>, transform_indices = @transform_6, window_bounds = array<i64: 1, 128>}, {transform_indices = @transform_7, window_bounds = array<i64: 16, 32>}, {pipeline_mode = #tpu.pipeline_mode<synchronous>, transform_indices = @transform_8, window_bounds = array<i64: 32, 32>}, {pipeline_mode = #tpu.pipeline_mode<synchronous>, transform_indices = @transform_9, window_bounds = array<i64: 1, 32>}, {pipeline_mode = #tpu.pipeline_mode<synchronous>, transform_indices = @transform_10, window_bounds = array<i64: 32, 64>}, {pipeline_mode = #tpu.pipeline_mode<synchronous>, transform_indices = @transform_11, window_bounds = array<i64: 1, 64>}, {pipeline_mode = #tpu.pipeline_mode<synchronous>, transform_indices = @transform_12, window_bounds = array<i64: 64, 128>}, {pipeline_mode = #tpu.pipeline_mode<synchronous>, transform_indices = @transform_13, window_bounds = array<i64: 1, 128>}, {transform_indices = @transform_14, window_bounds = array<i64: 2, 16, 128>}, {transform_indices = @transform_15, window_bounds = array<i64: 16, 128>}]} {
    %0 = tpu.iota {dimensions = array<i32: 1>} : vector<16x128xi32>
    %c8_i32 = arith.constant 8 : i32
    %1 = vector.broadcast %c8_i32 : i32 to vector<16x128xi32>
    %2 = arith.cmpi slt, %0, %1 : vector<16x128xi32>
    %c0 = arith.constant 0 : index
    %c0_0 = arith.constant 0 : index
    %3 = vector.load %arg1[%c0, %c0_0] : memref<16x32xbf16, #tpu.memory_space<vmem>>, vector<16x32xbf16>
    %c0_1 = arith.constant 0 : index
    %c0_2 = arith.constant 0 : index
    %4 = vector.load %arg2[%c0_1, %c0_2] : memref<32x32xbf16, #tpu.memory_space<vmem>>, vector<32x32xbf16>
    %cst = arith.constant dense<0.000000e+00> : vector<16x32xf32>
    %5 = tpu.matmul %3, %4, %cst {dimension_numbers = #tpu.dot_dimension_numbers<[1], [0], [0], [1], [0, 0, 1, 1], [], []>} : vector<16x32xbf16>, vector<32x32xbf16>, vector<16x32xf32> -> vector<16x32xf32>
    %c0_3 = arith.constant 0 : index
    %c0_4 = arith.constant 0 : index
    %6 = vector.load %arg3[%c0_3, %c0_4] : memref<1x32xf32, #tpu.memory_space<vmem>>, vector<1x32xf32>
    %7 = vector.broadcast %6 : vector<1x32xf32> to vector<16x32xf32>
    %8 = arith.addf %5, %7 : vector<16x32xf32>
    %cst_5 = arith.constant 0.000000e+00 : f32
    %9 = vector.broadcast %cst_5 : f32 to vector<16x32xf32>
    %10 = arith.maximumf %8, %9 : vector<16x32xf32>
    %11 = arith.truncf %10 : vector<16x32xf32> to vector<16x32xbf16>
    %c0_6 = arith.constant 0 : index
    %c0_7 = arith.constant 0 : index
    %12 = vector.load %arg4[%c0_6, %c0_7] : memref<32x64xbf16, #tpu.memory_space<vmem>>, vector<32x64xbf16>
    %cst_8 = arith.constant dense<0.000000e+00> : vector<16x64xf32>
    %13 = tpu.matmul %11, %12, %cst_8 {dimension_numbers = #tpu.dot_dimension_numbers<[1], [0], [0], [1], [0, 0, 1, 1], [], []>} : vector<16x32xbf16>, vector<32x64xbf16>, vector<16x64xf32> -> vector<16x64xf32>
    %c0_9 = arith.constant 0 : index
    %c0_10 = arith.constant 0 : index
    %14 = vector.load %arg5[%c0_9, %c0_10] : memref<1x64xf32, #tpu.memory_space<vmem>>, vector<1x64xf32>
    %15 = vector.broadcast %14 : vector<1x64xf32> to vector<16x64xf32>
    %16 = arith.addf %13, %15 : vector<16x64xf32>
    %cst_11 = arith.constant 0.000000e+00 : f32
    %17 = vector.broadcast %cst_11 : f32 to vector<16x64xf32>
    %18 = arith.maximumf %16, %17 : vector<16x64xf32>
    %19 = arith.truncf %18 : vector<16x64xf32> to vector<16x64xbf16>
    %c0_12 = arith.constant 0 : index
    %c0_13 = arith.constant 0 : index
    %20 = vector.load %arg6[%c0_12, %c0_13] : memref<64x128xbf16, #tpu.memory_space<vmem>>, vector<64x128xbf16>
    %cst_14 = arith.constant dense<0.000000e+00> : vector<16x128xf32>
    %21 = tpu.matmul %19, %20, %cst_14 {dimension_numbers = #tpu.dot_dimension_numbers<[1], [0], [0], [1], [0, 0, 1, 1], [], []>} : vector<16x64xbf16>, vector<64x128xbf16>, vector<16x128xf32> -> vector<16x128xf32>
    %c0_15 = arith.constant 0 : index
    %c0_16 = arith.constant 0 : index
    %22 = vector.load %arg7[%c0_15, %c0_16] : memref<1x128xf32, #tpu.memory_space<vmem>>, vector<1x128xf32>
    %23 = vector.broadcast %22 : vector<1x128xf32> to vector<16x128xf32>
    %24 = arith.addf %21, %23 : vector<16x128xf32>
    %cst_17 = arith.constant 2.000000e+01 : f32
    %25 = vector.broadcast %cst_17 : f32 to vector<16x128xf32>
    %26 = arith.cmpf ogt, %24, %25 : vector<16x128xf32>
    %cst_18 = arith.constant 2.000000e+01 : f32
    %27 = vector.broadcast %cst_18 : f32 to vector<16x128xf32>
    %28 = arith.minimumf %24, %27 : vector<16x128xf32>
    %29 = math.exp %28 : vector<16x128xf32>
    %cst_19 = arith.constant 1.000000e+00 : f32
    %30 = vector.broadcast %cst_19 : f32 to vector<16x128xf32>
    %31 = arith.addf %30, %29 : vector<16x128xf32>
    %32 = math.log %31 : vector<16x128xf32>
    %33 = arith.select %26, %24, %32 : vector<16x128xi1>, vector<16x128xf32>
    %cst_20 = arith.constant 0.000000e+00 : f32
    %34 = vector.broadcast %cst_20 : f32 to vector<16x128xf32>
    %35 = arith.select %2, %33, %34 : vector<16x128xi1>, vector<16x128xf32>
    %c0_21 = arith.constant 0 : index
    %c0_22 = arith.constant 0 : index
    %c0_23 = arith.constant 0 : index
    %36 = vector.load %arg15[%c0_21, %c0_22, %c0_23] : memref<2x16x128xf32, #tpu.memory_space<vmem>>, vector<1x16x128xf32>
    %37 = vector.shape_cast %36 : vector<1x16x128xf32> to vector<16x128xf32>
    %38 = vector.shape_cast %35 : vector<16x128xf32> to vector<1x16x128xf32>
    tpu.vector_store %arg15[%c0_21, %c0_22, %c0_23], %38 {strides = array<i32>} : memref<2x16x128xf32, #tpu.memory_space<vmem>>, vector<1x16x128xf32>,
    %cst_24 = arith.constant dense<0.000000e+00> : vector<16xf32>
    %39 = vector.multi_reduction <add>, %35, %cst_24 [1] : vector<16x128xf32> to vector<16xf32>
    %40 = vector.shape_cast %39 : vector<16xf32> to vector<16x1xf32>
    %cst_25 = arith.constant 8.000000e+00 : f32
    %41 = vector.broadcast %cst_25 : f32 to vector<16x1xf32>
    %42 = arith.addf %40, %41 : vector<16x1xf32>
    %43 = arith.mulf %35, %35 : vector<16x128xf32>
    %cst_26 = arith.constant dense<0.000000e+00> : vector<16xf32>
    %44 = vector.multi_reduction <add>, %43, %cst_26 [1] : vector<16x128xf32> to vector<16xf32>
    %45 = vector.shape_cast %44 : vector<16xf32> to vector<16x1xf32>
    %c0_27 = arith.constant 0 : index
    %c0_28 = arith.constant 0 : index
    %46 = vector.load %arg8[%c0_27, %c0_28] : memref<16x32xbf16, #tpu.memory_space<vmem>>, vector<16x32xbf16>
    %c0_29 = arith.constant 0 : index
    %c0_30 = arith.constant 0 : index
    %47 = vector.load %arg9[%c0_29, %c0_30] : memref<32x32xbf16, #tpu.memory_space<vmem>>, vector<32x32xbf16>
    %cst_31 = arith.constant dense<0.000000e+00> : vector<16x32xf32>
    %48 = tpu.matmul %46, %47, %cst_31 {dimension_numbers = #tpu.dot_dimension_numbers<[1], [0], [0], [1], [0, 0, 1, 1], [], []>} : vector<16x32xbf16>, vector<32x32xbf16>, vector<16x32xf32> -> vector<16x32xf32>
    %c0_32 = arith.constant 0 : index
    %c0_33 = arith.constant 0 : index
    %49 = vector.load %arg10[%c0_32, %c0_33] : memref<1x32xf32, #tpu.memory_space<vmem>>, vector<1x32xf32>
    %50 = vector.broadcast %49 : vector<1x32xf32> to vector<16x32xf32>
    %51 = arith.addf %48, %50 : vector<16x32xf32>
    %cst_34 = arith.constant 0.000000e+00 : f32
    %52 = vector.broadcast %cst_34 : f32 to vector<16x32xf32>
    %53 = arith.maximumf %51, %52 : vector<16x32xf32>
    %54 = arith.truncf %53 : vector<16x32xf32> to vector<16x32xbf16>
    %c0_35 = arith.constant 0 : index
    %c0_36 = arith.constant 0 : index
    %55 = vector.load %arg11[%c0_35, %c0_36] : memref<32x64xbf16, #tpu.memory_space<vmem>>, vector<32x64xbf16>
    %cst_37 = arith.constant dense<0.000000e+00> : vector<16x64xf32>
    %56 = tpu.matmul %54, %55, %cst_37 {dimension_numbers = #tpu.dot_dimension_numbers<[1], [0], [0], [1], [0, 0, 1, 1], [], []>} : vector<16x32xbf16>, vector<32x64xbf16>, vector<16x64xf32> -> vector<16x64xf32>
    %c0_38 = arith.constant 0 : index
    %c0_39 = arith.constant 0 : index
    %57 = vector.load %arg12[%c0_38, %c0_39] : memref<1x64xf32, #tpu.memory_space<vmem>>, vector<1x64xf32>
    %58 = vector.broadcast %57 : vector<1x64xf32> to vector<16x64xf32>
    %59 = arith.addf %56, %58 : vector<16x64xf32>
    %cst_40 = arith.constant 0.000000e+00 : f32
    %60 = vector.broadcast %cst_40 : f32 to vector<16x64xf32>
    %61 = arith.maximumf %59, %60 : vector<16x64xf32>
    %62 = arith.truncf %61 : vector<16x64xf32> to vector<16x64xbf16>
    %c0_41 = arith.constant 0 : index
    %c0_42 = arith.constant 0 : index
    %63 = vector.load %arg13[%c0_41, %c0_42] : memref<64x128xbf16, #tpu.memory_space<vmem>>, vector<64x128xbf16>
    %cst_43 = arith.constant dense<0.000000e+00> : vector<16x128xf32>
    %64 = tpu.matmul %62, %63, %cst_43 {dimension_numbers = #tpu.dot_dimension_numbers<[1], [0], [0], [1], [0, 0, 1, 1], [], []>} : vector<16x64xbf16>, vector<64x128xbf16>, vector<16x128xf32> -> vector<16x128xf32>
    %c0_44 = arith.constant 0 : index
    %c0_45 = arith.constant 0 : index
    %65 = vector.load %arg14[%c0_44, %c0_45] : memref<1x128xf32, #tpu.memory_space<vmem>>, vector<1x128xf32>
    %66 = vector.broadcast %65 : vector<1x128xf32> to vector<16x128xf32>
    %67 = arith.addf %64, %66 : vector<16x128xf32>
    %cst_46 = arith.constant 2.000000e+01 : f32
    %68 = vector.broadcast %cst_46 : f32 to vector<16x128xf32>
    %69 = arith.cmpf ogt, %67, %68 : vector<16x128xf32>
    %cst_47 = arith.constant 2.000000e+01 : f32
    %70 = vector.broadcast %cst_47 : f32 to vector<16x128xf32>
    %71 = arith.minimumf %67, %70 : vector<16x128xf32>
    %72 = math.exp %71 : vector<16x128xf32>
    %cst_48 = arith.constant 1.000000e+00 : f32
    %73 = vector.broadcast %cst_48 : f32 to vector<16x128xf32>
    %74 = arith.addf %73, %72 : vector<16x128xf32>
    %75 = math.log %74 : vector<16x128xf32>
    %76 = arith.select %69, %67, %75 : vector<16x128xi1>, vector<16x128xf32>
    %cst_49 = arith.constant 0.000000e+00 : f32
    %77 = vector.broadcast %cst_49 : f32 to vector<16x128xf32>
    %78 = arith.select %2, %76, %77 : vector<16x128xi1>, vector<16x128xf32>
    %c1 = arith.constant 1 : index
    %c0_50 = arith.constant 0 : index
    %c0_51 = arith.constant 0 : index
    %79 = vector.load %arg15[%c1, %c0_50, %c0_51] : memref<2x16x128xf32, #tpu.memory_space<vmem>>, vector<1x16x128xf32>
    %80 = vector.shape_cast %79 : vector<1x16x128xf32> to vector<16x128xf32>
    %81 = vector.shape_cast %78 : vector<16x128xf32> to vector<1x16x128xf32>
    tpu.vector_store %arg15[%c1, %c0_50, %c0_51], %81 {strides = array<i32>} : memref<2x16x128xf32, #tpu.memory_space<vmem>>, vector<1x16x128xf32>,
    %cst_52 = arith.constant dense<0.000000e+00> : vector<16xf32>
    %82 = vector.multi_reduction <add>, %78, %cst_52 [1] : vector<16x128xf32> to vector<16xf32>
    %83 = vector.shape_cast %82 : vector<16xf32> to vector<16x1xf32>
    %cst_53 = arith.constant 8.000000e+00 : f32
    %84 = vector.broadcast %cst_53 : f32 to vector<16x1xf32>
    %85 = arith.addf %83, %84 : vector<16x1xf32>
    %86 = arith.mulf %78, %78 : vector<16x128xf32>
    %cst_54 = arith.constant dense<0.000000e+00> : vector<16xf32>
    %87 = vector.multi_reduction <add>, %86, %cst_54 [1] : vector<16x128xf32> to vector<16xf32>
    %88 = vector.shape_cast %87 : vector<16xf32> to vector<16x1xf32>
    %89 = tpu.reciprocal %42 {approx = true} : vector<16x1xf32> -> vector<16x1xf32>
    %90 = tpu.reciprocal %85 {approx = true} : vector<16x1xf32> -> vector<16x1xf32>
    %91 = arith.mulf %89, %89 : vector<16x1xf32>
    %92 = arith.mulf %45, %91 : vector<16x1xf32>
    %93 = arith.mulf %90, %90 : vector<16x1xf32>
    %94 = arith.mulf %88, %93 : vector<16x1xf32>
    %c0_55 = arith.constant 0 : index
    %c0_56 = arith.constant 0 : index
    %c0_57 = arith.constant 0 : index
    %95 = vector.load %arg15[%c0_55, %c0_56, %c0_57] : memref<2x16x128xf32, #tpu.memory_space<vmem>>, vector<1x16x128xf32>
    %96 = vector.shape_cast %95 : vector<1x16x128xf32> to vector<16x128xf32>
    %c1_58 = arith.constant 1 : index
    %c0_59 = arith.constant 0 : index
    %c0_60 = arith.constant 0 : index
    %97 = vector.load %arg15[%c1_58, %c0_59, %c0_60] : memref<2x16x128xf32, #tpu.memory_space<vmem>>, vector<1x16x128xf32>
    %98 = vector.shape_cast %97 : vector<1x16x128xf32> to vector<16x128xf32>
    %99 = arith.mulf %96, %98 : vector<16x128xf32>
    %cst_61 = arith.constant dense<0.000000e+00> : vector<16xf32>
    %100 = vector.multi_reduction <add>, %99, %cst_61 [1] : vector<16x128xf32> to vector<16xf32>
    %101 = vector.shape_cast %100 : vector<16xf32> to vector<16x1xf32>
    %102 = arith.addf %92, %94 : vector<16x1xf32>
    %cst_62 = arith.constant 2.000000e+00 : f32
    %103 = vector.broadcast %cst_62 : f32 to vector<16x1xf32>
    %104 = arith.mulf %103, %101 : vector<16x1xf32>
    %105 = arith.mulf %89, %90 : vector<16x1xf32>
    %106 = arith.mulf %104, %105 : vector<16x1xf32>
    %107 = arith.subf %102, %106 : vector<16x1xf32>
    %cst_63 = arith.constant 5.000000e-01 : f32
    %108 = vector.broadcast %cst_63 : f32 to vector<16x1xf32>
    %109 = arith.mulf %108, %107 : vector<16x1xf32>
    %cst_64 = arith.constant 0.000000e+00 : f32
    %110 = vector.broadcast %cst_64 : f32 to vector<16x1xf32>
    %111 = arith.maximumf %109, %110 : vector<16x1xf32>
    %112 = math.sqrt %111 : vector<16x1xf32>
    %cst_65 = arith.constant 1.000000e+00 : f32
    %113 = vector.broadcast %cst_65 : f32 to vector<16x1xf32>
    %114 = arith.mulf %112, %113 : vector<16x1xf32>
    %cst_66 = arith.constant 1.000000e+00 : f32
    %115 = vector.broadcast %cst_66 : f32 to vector<16x1xf32>
    %116 = arith.mulf %112, %115 : vector<16x1xf32>
    %117 = arith.addf %114, %116 : vector<16x1xf32>
    %cst_67 = arith.constant 5.000000e-01 : f32
    %118 = vector.broadcast %cst_67 : f32 to vector<16x1xf32>
    %119 = arith.mulf %117, %118 : vector<16x1xf32>
    %cst_68 = arith.constant 8.000000e+00 : f32
    %120 = vector.broadcast %cst_68 : f32 to vector<16x1xf32>
    %121 = arith.mulf %120, %89 : vector<16x1xf32>
    %cst_69 = arith.constant 8.000000e+00 : f32
    %122 = vector.broadcast %cst_69 : f32 to vector<16x1xf32>
    %123 = arith.mulf %122, %90 : vector<16x1xf32>
    %124 = arith.addf %121, %123 : vector<16x1xf32>
    %125 = tpu.reciprocal %124 {approx = true} : vector<16x1xf32> -> vector<16x1xf32>
    %126 = arith.mulf %121, %125 : vector<16x1xf32>
    %127 = arith.mulf %123, %125 : vector<16x1xf32>
    %128 = arith.maximumf %126, %127 : vector<16x1xf32>
    %129 = arith.cmpf olt, %114, %119 : vector<16x1xf32>
    %cst_70 = arith.constant 0.000000e+00 : f32
    %130 = vector.broadcast %cst_70 : f32 to vector<16x1xf32>
    %131 = arith.subf %130, %126 : vector<16x1xf32>
    %132 = math.exp %131 : vector<16x1xf32>
    %cst_71 = arith.constant 1.000000e+00 : f32
    %133 = vector.broadcast %cst_71 : f32 to vector<16x1xf32>
    %134 = arith.addf %128, %133 : vector<16x1xf32>
    %135 = arith.subf %134, %126 : vector<16x1xf32>
    %cst_72 = arith.constant 0.000000e+00 : f32
    %136 = vector.broadcast %cst_72 : f32 to vector<16x1xf32>
    %137 = arith.subf %136, %135 : vector<16x1xf32>
    %138 = math.exp %137 : vector<16x1xf32>
    %139 = arith.select %129, %132, %138 : vector<16x1xi1>, vector<16x1xf32>
    %140 = arith.cmpf olt, %116, %119 : vector<16x1xf32>
    %cst_73 = arith.constant 0.000000e+00 : f32
    %141 = vector.broadcast %cst_73 : f32 to vector<16x1xf32>
    %142 = arith.subf %141, %127 : vector<16x1xf32>
    %143 = math.exp %142 : vector<16x1xf32>
    %cst_74 = arith.constant 1.000000e+00 : f32
    %144 = vector.broadcast %cst_74 : f32 to vector<16x1xf32>
    %145 = arith.addf %128, %144 : vector<16x1xf32>
    %146 = arith.subf %145, %127 : vector<16x1xf32>
    %cst_75 = arith.constant 0.000000e+00 : f32
    %147 = vector.broadcast %cst_75 : f32 to vector<16x1xf32>
    %148 = arith.subf %147, %146 : vector<16x1xf32>
    %149 = math.exp %148 : vector<16x1xf32>
    %150 = arith.select %140, %143, %149 : vector<16x1xi1>, vector<16x1xf32>
    %151 = arith.addf %139, %150 : vector<16x1xf32>
    %152 = tpu.reciprocal %151 {approx = true} : vector<16x1xf32> -> vector<16x1xf32>
    %153 = arith.mulf %139, %152 : vector<16x1xf32>
    %154 = arith.mulf %150, %152 : vector<16x1xf32>
    %cst_76 = arith.constant 2.000000e+00 : f32
    %155 = vector.broadcast %cst_76 : f32 to vector<16x1xf32>
    %156 = arith.mulf %153, %155 : vector<16x1xf32>
    %157 = math.exp %156 : vector<16x1xf32>
    %cst_77 = arith.constant 2.000000e+00 : f32
    %158 = vector.broadcast %cst_77 : f32 to vector<16x1xf32>
    %159 = arith.mulf %154, %158 : vector<16x1xf32>
    %160 = math.exp %159 : vector<16x1xf32>
    %161 = arith.addf %157, %160 : vector<16x1xf32>
    %162 = arith.divf %157, %161 : vector<16x1xf32>
    %163 = arith.divf %160, %161 : vector<16x1xf32>
    %c0_78 = arith.constant 0 : index
    %c0_79 = arith.constant 0 : index
    %c0_80 = arith.constant 0 : index
    %164 = vector.load %arg15[%c0_78, %c0_79, %c0_80] : memref<2x16x128xf32, #tpu.memory_space<vmem>>, vector<1x16x128xf32>
    %165 = vector.shape_cast %164 : vector<1x16x128xf32> to vector<16x128xf32>
    %166 = vector.broadcast %162 : vector<16x1xf32> to vector<16x128xf32>
    %167 = arith.mulf %165, %166 : vector<16x128xf32>
    %c1_81 = arith.constant 1 : index
    %c0_82 = arith.constant 0 : index
    %c0_83 = arith.constant 0 : index
    %168 = vector.load %arg15[%c1_81, %c0_82, %c0_83] : memref<2x16x128xf32, #tpu.memory_space<vmem>>, vector<1x16x128xf32>
    %169 = vector.shape_cast %168 : vector<1x16x128xf32> to vector<16x128xf32>
    %170 = vector.broadcast %163 : vector<16x1xf32> to vector<16x128xf32>
    %171 = arith.mulf %169, %170 : vector<16x128xf32>
    %172 = arith.addf %167, %171 : vector<16x128xf32>
    %c0_84 = arith.constant 0 : index
    %c0_85 = arith.constant 0 : index
    %173 = vector.load %arg16[%c0_84, %c0_85] : memref<16x128xf32, #tpu.memory_space<vmem>>, vector<16x128xf32>
    tpu.vector_store %arg16[%c0_84, %c0_85], %172 {strides = array<i32>} : memref<16x128xf32, #tpu.memory_space<vmem>>, vector<16x128xf32>,
    return
  }
  func.func @transform_0(%arg0: i32) -> (i32, i32) {
    %c0_i32 = arith.constant 0 : i32
    %c0_i32_0 = arith.constant 0 : i32
    return %arg0, %c0_i32 : i32, i32
  }
  func.func @transform_1(%arg0: i32) -> (i32, i32) {
    %c0_i32 = arith.constant 0 : i32
    %c0_i32_0 = arith.constant 0 : i32
    %c0_i32_1 = arith.constant 0 : i32
    return %c0_i32, %c0_i32_0 : i32, i32
  }
  func.func @transform_2(%arg0: i32) -> (i32, i32) {
    %c0_i32 = arith.constant 0 : i32
    %c0_i32_0 = arith.constant 0 : i32
    %c0_i32_1 = arith.constant 0 : i32
    return %c0_i32, %c0_i32_0 : i32, i32
  }
  func.func @transform_3(%arg0: i32) -> (i32, i32) {
    %c0_i32 = arith.constant 0 : i32
    %c0_i32_0 = arith.constant 0 : i32
    %c0_i32_1 = arith.constant 0 : i32
    return %c0_i32, %c0_i32_0 : i32, i32
  }
  func.func @transform_4(%arg0: i32) -> (i32, i32) {
    %c0_i32 = arith.constant 0 : i32
    %c0_i32_0 = arith.constant 0 : i32
    %c0_i32_1 = arith.constant 0 : i32
    return %c0_i32, %c0_i32_0 : i32, i32
  }
  func.func @transform_5(%arg0: i32) -> (i32, i32) {
    %c0_i32 = arith.constant 0 : i32
    %c0_i32_0 = arith.constant 0 : i32
    %c0_i32_1 = arith.constant 0 : i32
    return %c0_i32, %c0_i32_0 : i32, i32
  }
  func.func @transform_6(%arg0: i32) -> (i32, i32) {
    %c0_i32 = arith.constant 0 : i32
    %c0_i32_0 = arith.constant 0 : i32
    %c0_i32_1 = arith.constant 0 : i32
    return %c0_i32, %c0_i32_0 : i32, i32
  }
  func.func @transform_7(%arg0: i32) -> (i32, i32) {
    %c0_i32 = arith.constant 0 : i32
    %c0_i32_0 = arith.constant 0 : i32
    return %arg0, %c0_i32 : i32, i32
  }
  func.func @transform_8(%arg0: i32) -> (i32, i32) {
    %c0_i32 = arith.constant 0 : i32
    %c0_i32_0 = arith.constant 0 : i32
    %c0_i32_1 = arith.constant 0 : i32
    return %c0_i32, %c0_i32_0 : i32, i32
  }
  func.func @transform_9(%arg0: i32) -> (i32, i32) {
    %c0_i32 = arith.constant 0 : i32
    %c0_i32_0 = arith.constant 0 : i32
    %c0_i32_1 = arith.constant 0 : i32
    return %c0_i32, %c0_i32_0 : i32, i32
  }
  func.func @transform_10(%arg0: i32) -> (i32, i32) {
    %c0_i32 = arith.constant 0 : i32
    %c0_i32_0 = arith.constant 0 : i32
    %c0_i32_1 = arith.constant 0 : i32
    return %c0_i32, %c0_i32_0 : i32, i32
  }
  func.func @transform_11(%arg0: i32) -> (i32, i32) {
    %c0_i32 = arith.constant 0 : i32
    %c0_i32_0 = arith.constant 0 : i32
    %c0_i32_1 = arith.constant 0 : i32
    return %c0_i32, %c0_i32_0 : i32, i32
  }
  func.func @transform_12(%arg0: i32) -> (i32, i32) {
    %c0_i32 = arith.constant 0 : i32
    %c0_i32_0 = arith.constant 0 : i32
    %c0_i32_1 = arith.constant 0 : i32
    return %c0_i32, %c0_i32_0 : i32, i32
  }
  func.func @transform_13(%arg0: i32) -> (i32, i32) {
    %c0_i32 = arith.constant 0 : i32
    %c0_i32_0 = arith.constant 0 : i32
    %c0_i32_1 = arith.constant 0 : i32
    return %c0_i32, %c0_i32_0 : i32, i32
  }
  func.func @transform_14(%arg0: i32) -> (i32, i32, i32) {
    %c0_i32 = arith.constant 0 : i32
    %c0_i32_0 = arith.constant 0 : i32
    %c0_i32_1 = arith.constant 0 : i32
    return %c0_i32, %arg0, %c0_i32_0 : i32, i32, i32
  }
  func.func @transform_15(%arg0: i32) -> (i32, i32) {
    %c0_i32 = arith.constant 0 : i32
    %c0_i32_0 = arith.constant 0 : i32
    return %arg0, %c0_i32 : i32, i32
  }
}

</mosaic_0001>

<bundles_post_ra>
// kernel: _camvf_forward_jit.1
= control target key start
LH: loop header
LB: loop body
LE: loop exit
PB: predicated region body
PF: predicated region fallthrough
CT: control target
= control target key end

     0   :  { %21 = vsyncpa [#allocation3], 0  ;;  %s1514_s0 = inlined_call_operand.vmem [shape: bf16[16,32], index: 0, kind: input, shape index: {}]   ;;  %s1515_s1 = inlined_call_operand.vmem [shape: bf16[32,32], index: 1, kind: input, shape index: {}]   ;;  %s1516_s2 = inlined_call_operand.vmem [shape: f32[1,32], index: 2, kind: input, shape index: {}]   ;;  %s1517_s3 = inlined_call_operand.hbm [shape: bf16[32,64], index: 3, kind: input, shape index: {}]   ;;  %s1518_s4 = inlined_call_operand.vmem [shape: f32[1,64], index: 4, kind: input, shape index: {}]   ;;  %s1519_s5 = inlined_call_operand.vmem [shape: bf16[64,128], index: 5, kind: input, shape index: {}]   ;;  %s1520_s6 = inlined_call_operand.hbm [shape: f32[1,128], index: 6, kind: input, shape index: {}]   ;;  %s1521_s7 = inlined_call_operand.vmem [shape: bf16[16,32], index: 7, kind: input, shape index: {}]   ;;  %s1522_s8 = inlined_call_operand.hbm [shape: bf16[32,32], index: 8, kind: input, shape index: {}]   ;;  %s1523_s9 = inlined_call_operand.hbm [shape: f32[1,32], index: 9, kind: input, shape index: {}]   ;;  %s1524_s10 = inlined_call_operand.hbm [shape: bf16[32,64], index: 10, kind: input, shape index: {}]   ;;  %s1525_s11 = inlined_call_operand.hbm [shape: f32[1,64], index: 11, kind: input, shape index: {}]   ;;  %s1526_s12 = inlined_call_operand.vmem [shape: bf16[64,128], index: 12, kind: input, shape index: {}]   ;;  %s1527_s13 = inlined_call_operand.hbm [shape: f32[1,128], index: 13, kind: input, shape index: {}]   ;;  %s1528_s14 = inlined_call_operand.vmem [shape: f32[2,16,128], index: 14, kind: output, shape index: {0}]   ;;  %s1529_s15 = inlined_call_operand.vmem [shape: f32[16,128], index: 15, kind: output, shape index: {1}]  }
   0x1   :  { %22 = vsyncpa [#allocation5], 0 }
   0x2   :  { %23 = vsyncpa [#allocation8], 0 }
   0x3   :  { %24 = vsyncpa [#allocation11], 0  ;;  %s1186_s18 = smov [#allocation4]   ;;  %s1187_s20 = smov [#allocation7]  }
   0x4   :  { %s53_s19 = sshll.u32 %s1186_s18, 4  ;;  %s77_s21 = sshll.u32 %s1187_s20, 4  ;;  %s54_s19 = int_to_ptr.vmem [resolvable:$true] %s53_s19  ;;  %s78_s21 = int_to_ptr.vmem [resolvable:$true] %s77_s21 }
   0x5   :  { %s1024_s24 = scalar_lea.hbm %s1520_s6, 16 }
   0x6   :  { %p1025_p0 = scmp.ne.s32.totalorder %s1520_s6, %s1024_s24  ;;  %p1028_p1 = scmp.lt.u32.totalorder %s1024_s24, %s1520_s6 }
   0x8   :  { %p1030_p2 = pnand %p1028_p1, %p1025_p0 }
   0xa   :  { %1033 = shalt.err (!%p1030_p2)
}
   0xb   :  { %s1034_s29 = scalar_lea.vmem %s54_s19, 16  ;;  %s1038_s30 = scalar_lea.vmem %s54_s19, 32 }
   0xc   :  { %p1035_p3 = scmp.ne.s32.totalorder %s54_s19, %s1034_s29  ;;  %p1039_p4 = scmp.lt.s32.totalorder %s54_s19, %s54_s19 }
   0xd   :  { %p1040_p5 = scmp.lt.s32.totalorder %s1038_s30, %s1034_s29 }
   0xf   :  { %p1041_p6 = por %p1040_p5, %p1039_p4 }
  0x11   :  { %p1042_p7 = pnand %p1041_p6, %p1035_p3 }
  0x13   :  { %1045 = shalt.err (!%p1042_p7)
}
  0x14   :  { %56 = dma.hbm_to_vmem [thread:$0]  %s1520_s6, 16, %s54_s19, [#allocation5]  }
  0x15   :  { %s1046_s22 = scalar_lea.hbm %s1523_s9, 16 }
  0x16   :  { %p1047_p8 = scmp.ne.s32.totalorder %s1523_s9, %s1046_s22  ;;  %p1050_p9 = scmp.lt.u32.totalorder %s1046_s22, %s1523_s9 }
  0x18   :  { %p1052_p10 = pnand %p1050_p9, %p1047_p8 }
  0x1a   :  { %1055 = shalt.err (!%p1052_p10)
}
  0x1b   :  { %s1056_s27 = scalar_lea.vmem %s78_s21, 16  ;;  %s1060_s28 = scalar_lea.vmem %s78_s21, 32 }
  0x1c   :  { %p1057_p11 = scmp.ne.s32.totalorder %s78_s21, %s1056_s27  ;;  %p1061_p12 = scmp.lt.s32.totalorder %s78_s21, %s78_s21 }
  0x1d   :  { %p1062_p13 = scmp.lt.s32.totalorder %s1060_s28, %s1056_s27 }
  0x1f   :  { %p1063_p0 = por %p1062_p13, %p1061_p12 }
  0x21   :  { %p1064_p1 = pnand %p1063_p0, %p1057_p11 }
  0x23   :  { %1067 = shalt.err (!%p1064_p1)
}
  0x24   :  { %80 = dma.hbm_to_vmem [thread:$0]  %s1523_s9, 16, %s78_s21, [#allocation8]  }
  0x25   :  { %s1188_s29 = smov [#allocation10]   ;;  %s1189_s16 = smov [#allocation2]  }
  0x26   :  { %s99_s30 = sshll.u32 %s1188_s29, 4  ;;  %s36_s17 = sshll.u32 %s1189_s16, 4  ;;  %s100_s30 = int_to_ptr.vmem [resolvable:$true] %s99_s30  ;;  %s1301_s17 = int_to_ptr.vmem [resolvable:$true] %s36_s17 }
  0x27   :  { %s1068_s22 = scalar_lea.hbm %s1525_s11, 16 }
  0x28   :  { %p1069_p2 = scmp.ne.s32.totalorder %s1525_s11, %s1068_s22  ;;  %p1072_p3 = scmp.lt.u32.totalorder %s1068_s22, %s1525_s11 }
  0x2a   :  { %p1074_p4 = pnand %p1072_p3, %p1069_p2 }
  0x2c   :  { %1077 = shalt.err (!%p1074_p4)
}
  0x2d   :  { %s1078_s9 = scalar_lea.vmem %s100_s30, 16  ;;  %s1082_s21 = scalar_lea.vmem %s100_s30, 32 }
  0x2e   :  { %p1079_p5 = scmp.ne.s32.totalorder %s100_s30, %s1078_s9  ;;  %p1083_p6 = scmp.lt.s32.totalorder %s100_s30, %s100_s30 }
  0x2f   :  { %p1084_p7 = scmp.lt.s32.totalorder %s1082_s21, %s1078_s9 }
  0x31   :  { %p1085_p8 = por %p1084_p7, %p1083_p6 }
  0x33   :  { %p1086_p9 = pnand %p1085_p8, %p1079_p5 }
  0x35   :  { %1089 = shalt.err (!%p1086_p9)
}
  0x36   :  { %102 = dma.hbm_to_vmem [thread:$0]  %s1525_s11, 16, %s100_s30, [#allocation11]  }
  0x37   :  { %s1090_s29 = scalar_lea.hbm %s1517_s3, 256 }
  0x38   :  { %p1091_p10 = scmp.ne.s32.totalorder %s1517_s3, %s1090_s29  ;;  %p1094_p11 = scmp.lt.u32.totalorder %s1090_s29, %s1517_s3 }
  0x3a   :  { %p1096_p12 = pnand %p1094_p11, %p1091_p10 }
  0x3c   :  { %1099 = shalt.err (!%p1096_p12)
}
  0x3d   :  { %s1100_s23 = scalar_lea.vmem %s1301_s17, 256  ;;  %p1105_p0 = scmp.lt.s32.totalorder %s1301_s17, %s1301_s17 }
  0x3e   :  { %p1101_p13 = scmp.ne.s32.totalorder %s1301_s17, %s1100_s23  ;;  %p1106_p1 = scmp.lt.s32.totalorder %s1100_s23, %s1100_s23 }
  0x40   :  { %p1107_p2 = por %p1106_p1, %p1105_p0 }
  0x42   :  { %p1108_p3 = pnand %p1107_p2, %p1101_p13 }
  0x44   :  { %1111 = shalt.err (!%p1108_p3)
}
  0x45   :  { %s1190_s11 = smov 64   ;;  %s1191_s30 = smov 4  }
  0x46   :  { %42 = dma.hbm_to_vmem [thread:$0]  %s1517_s3, 256, %s1301_s17, [#allocation3], %s1190_s11, %s1190_s11, %s1191_s30  }
  0x47   :  { %s1192_s26 = smov [#allocation6]   ;;  %s1193_s21 = smov [#allocation9]  }
  0x48   :  { %s64_s9 = sshll.u32 %s1192_s26, 4  ;;  %s86_s27 = sshll.u32 %s1193_s21, 4  ;;  %s65_s9 = int_to_ptr.vmem [resolvable:$true] %s64_s9  ;;  %s1335_s27 = int_to_ptr.vmem [resolvable:$true] %s86_s27 }
  0x49   :  { %s1112_s19 = scalar_lea.hbm %s1522_s8, 256 }
  0x4a   :  { %p1113_p4 = scmp.ne.s32.totalorder %s1522_s8, %s1112_s19  ;;  %p1116_p5 = scmp.lt.u32.totalorder %s1112_s19, %s1522_s8 }
  0x4c   :  { %p1118_p6 = pnand %p1116_p5, %p1113_p4 }
  0x4e   :  { %1121 = shalt.err (!%p1118_p6)
}
  0x4f   :  { %s1122_s3 = scalar_lea.vmem %s65_s9, 256  ;;  %p1127_p8 = scmp.lt.s32.totalorder %s65_s9, %s65_s9 }
  0x50   :  { %p1123_p7 = scmp.ne.s32.totalorder %s65_s9, %s1122_s3  ;;  %p1128_p9 = scmp.lt.s32.totalorder %s1122_s3, %s1122_s3 }
  0x52   :  { %p1129_p10 = por %p1128_p9, %p1127_p8 }
  0x54   :  { %p1130_p11 = pnand %p1129_p10, %p1123_p7 }
  0x56   :  { %1133 = shalt.err (!%p1130_p11)
}
  0x57   :  { %70 = dma.hbm_to_vmem [thread:$0]  %s1522_s8, 256, %s65_s9, [#allocation5], %s1190_s11, %s1190_s11, %s1191_s30  }
  0x58   :  { %s1134_s25 = scalar_lea.hbm %s1524_s10, 256 }
  0x59   :  { %p1135_p12 = scmp.ne.s32.totalorder %s1524_s10, %s1134_s25  ;;  %p1138_p13 = scmp.lt.u32.totalorder %s1134_s25, %s1524_s10 }
  0x5b   :  { %p1140_p0 = pnand %p1138_p13, %p1135_p12 }
  0x5d   :  { %1143 = shalt.err (!%p1140_p0)
}
  0x5e   :  { %s1144_s19 = scalar_lea.vmem %s1335_s27, 256  ;;  %p1149_p2 = scmp.lt.s32.totalorder %s1335_s27, %s1335_s27 }
  0x5f   :  { %p1145_p1 = scmp.ne.s32.totalorder %s1335_s27, %s1144_s19  ;;  %p1150_p3 = scmp.lt.s32.totalorder %s1144_s19, %s1144_s19 }
  0x61   :  { %p1151_p4 = por %p1150_p3, %p1149_p2 }
  0x63   :  { %p1152_p5 = pnand %p1151_p4, %p1145_p1 }
  0x65   :  { %1155 = shalt.err (!%p1152_p5)
}
  0x66   :  { %92 = dma.hbm_to_vmem [thread:$0]  %s1524_s10, 256, %s1335_s27, [#allocation8], %s1190_s11, %s1190_s11, %s1191_s30  }
  0x67   :  { %s1194_s29 = smov [#allocation12]   ;;  %s1156_s3 = scalar_lea.hbm %s1527_s13, 16 }
  0x68   :  { %s111_s16 = sshll.u32 %s1194_s29, 4  ;;  %p1157_p6 = scmp.ne.s32.totalorder %s1527_s13, %s1156_s3  ;;  %s112_s16 = int_to_ptr.vmem [resolvable:$true] %s111_s16 }
  0x69   :  { %p1160_p7 = scmp.lt.u32.totalorder %s1156_s3, %s1527_s13 }
  0x6b   :  { %p1162_p8 = pnand %p1160_p7, %p1157_p6 }
  0x6d   :  { %1165 = shalt.err (!%p1162_p8)
}
  0x6e   :  { %s1166_s25 = scalar_lea.vmem %s112_s16, 16  ;;  %s1170_s10 = scalar_lea.vmem %s112_s16, 32 }
  0x6f   :  { %p1167_p9 = scmp.ne.s32.totalorder %s112_s16, %s1166_s25  ;;  %p1171_p10 = scmp.lt.s32.totalorder %s112_s16, %s112_s16 }
  0x70   :  { %p1172_p11 = scmp.lt.s32.totalorder %s1170_s10, %s1166_s25 }
  0x72   :  { %p1173_p12 = por %p1172_p11, %p1171_p10 }
  0x74   :  { %p1174_p13 = pnand %p1173_p12, %p1167_p9 }
  0x76   :  { %1177 = shalt.err (!%p1174_p13)
}
  0x77   :  { %114 = dma.hbm_to_vmem [thread:$0]  %s1527_s13, 16, %s112_s16, [#allocation11]  }
  0x78   :  { %1178 = dma.done.wait [#allocation3], 256  }
  0x79   :  { %1179 = vsyncadd [#allocation3], 4294967040 }
  0x7a   :  { %1180 = dma.done.wait [#allocation5], 272  }
  0x7b   :  { %1181 = vsyncadd [#allocation5], 4294967024 }
  0x7c   :  { %1182 = dma.done.wait [#allocation8], 272  }
  0x7d   :  { %1183 = vsyncadd [#allocation8], 4294967024 }
  0x7e   :  { %1184 = dma.done.wait [#allocation11], 32  }
  0x7f   :  { %1185 = vsyncadd [#allocation11], 4294967264  ;;  %v1195_v0 = vmov 0.0   ;;  %vm1196_vm0 = vmmov 0   ;;  %v942_v1 = vld [vmem:[%s1515_s1] sm:$0xff]   ;;  %v943_v2 = vld [vmem:[%s1515_s1 + $0x8] sm:$0xff]  }
  0x80   :  { %875 = vmatprep.subr.bf16.mxu1 %v1195_v0  ;;  %879 = vmatprep.mubr.msk.bf16.mxu1 %vm1196_vm0, %v1195_v0  ;;  %v944_v3 = vld [vmem:[%s1514_s0] sm:$0xff]   ;;  %vm170_vm1 = vcmask 261120   ;;  %v946_v5 = vld [vmem:[#allocation2 + $0x8] sm:$0xff]   ;;  %v947_v17 = vld [vmem:[#allocation6] sm:$0xff]   ;;  %vm327_vm2 = vcmask 523264  }
  0x81   :  { %891 = vmatprep.subr.bf16.mxu0 %v1195_v0  ;;  %899 = vmatprep.mubr.msk.bf16.mxu0 %vm1196_vm0, %v1195_v0  ;;  %v945_v4 = vld [vmem:[#allocation2] sm:$0xff]   ;;  %v951_v7 = vld [vmem:[%s1519_s5 + $0x8] sm:$0xff]   ;;  %v952_v21 = vld [vmem:[%s1519_s5 + $0x10] sm:$0xff]  }
  0x82   :  { %876 = vmatpush3.bf16.msra.mxu1 %v942_v1  ;;  %v950_v6 = vld [vmem:[%s1519_s5] sm:$0xff]   ;;  %v953_v22 = vld [vmem:[%s1519_s5 + $0x18] sm:$0xff]   ;;  %v955_v24 = vld [vmem:[#allocation9 + $0x8] sm:$0xff]  }
  0x83   :  { %877 = vmatprep.subr.bf16.mxu1 %v1195_v0  ;;  %892 = vmatpush3.bf16.msra.mxu0 %v950_v6  ;;  %v819_v8 = vld [vmem:[%s1516_s2] ss:$0 sm:$0xff]  ;;  %v954_v23 = vld [vmem:[#allocation9] sm:$0xff]   ;;  %v834_v34 = vld [vmem:[#allocation7] ss:$0 sm:$0xff] }
  0x84   :  { %893 = vmatprep.subr.bf16.mxu0 %v1195_v0  ;;  %v948_v19 = vld [vmem:[#allocation6 + $0x8] sm:$0xff]   ;;  %v957_v46 = vld [vmem:[%s1526_s12 + $0x8] sm:$0xff]   ;;  %v958_v47 = vld [vmem:[%s1526_s12 + $0x10] sm:$0xff]  }
  0x85   :  { %v949_v20 = vld [vmem:[%s1521_s7] sm:$0xff]   ;;  %v959_v48 = vld [vmem:[%s1526_s12 + $0x18] sm:$0xff]   ;;  %v828_v49 = vld [vmem:[#allocation4] ss:$0 sm:$0xff] }
  0x86   :  { %878 = vmatpush3.bf16.msra.mxu1 %v943_v2  ;;  %v824_v25 = vld [vmem:[%s1518_s4] ss:$0 sm:$0xff]  ;;  %v839_v59 = vld [vmem:[#allocation10] ss:$0 sm:$0xff] }
  0x87   :  { %883 = vmatprep.subr.bf16.mxu1 %v1195_v0  ;;  %894 = vmatpush3.bf16.msra.mxu0 %v951_v7  ;;  %v956_v45 = vld [vmem:[%s1526_s12] sm:$0xff]  }
  0x88   :  { %895 = vmatprep.subr.bf16.mxu0 %v1195_v0 }
  0x89   :  { %880 = vmatmul.mubr.msk.bf16.vlgmr.msra.gmra.mrb[0].mxu1 %vm170_vm1, %v944_v3 }
  0x8a   :  { %887 = vmatprep.mubr.msk.bf16.mxu1 %vm1196_vm0, %v1195_v0  ;;  %884 = vmatpush3.bf16.msra.mxu1 %v945_v4 }
  0x8b   :  { %885 = vmatprep.subr.bf16.mxu1 %v1195_v0  ;;  %896 = vmatpush3.bf16.msra.mxu0 %v952_v21  ;;  %v843_v21 = vld [vmem:[#allocation12] ss:$0 sm:$0xff] }
  0x8c   :  { %897 = vmatprep.subr.bf16.mxu0 %v1195_v0 }
  0x8e   :  { %886 = vmatpush3.bf16.msra.mxu1 %v946_v5 }
  0x8f   :  { %903 = vmatprep.subr.bf16.mxu1 %v1195_v0  ;;  %898 = vmatpush3.bf16.msra.mxu0 %v953_v22 }
  0x90   :  { %919 = vmatprep.subr.bf16.mxu0 %v1195_v0 }
 0x15c   :  { %v208_v9 = vpop.f32.mrb[0].mxu1 }
 0x15d   :  { %v209_v10 = vadd.f32 %v819_v8, %v208_v9  ;;  %v881_v11 = vpop.f32.mrb[1].mxu1 }
 0x15e   :  { %v211_v12 = vpop.f32.mrb[2].mxu1 }
 0x15f   :  { %v212_v13 = vadd.f32 %v819_v8, %v211_v12  ;;  %v882_v14 = vpop.f32.mrb[3].mxu1  ;;  %v215_v15 = vmax.f32 %v209_v10, 0.0  ;;  %v137_v10 = vlaneseq }
 0x161   :  { %v216_v16 = vmax.f32 %v212_v13, 0.0  ;;  %v138_v11 = vand.u32 127, %v137_v10 }
 0x163   :  { %v217_v18 = vpack.c.bf16 %v216_v16, %v215_v15  ;;  %vm139_vm3 = vcmp.lt.s32.totalorder %v138_v11, 8 }
 0x165   :  { %888 = vmatmul.mubr.msk.bf16.vlgmr.msra.gmra.mrb[4].mxu1 %vm170_vm1, %v217_v18 }
 0x166   :  { %904 = vmatpush3.bf16.msra.mxu1 %v947_v17  ;;  %907 = vmatprep.mubr.msk.bf16.mxu1 %vm1196_vm0, %v1195_v0 }
 0x167   :  { %905 = vmatprep.subr.bf16.mxu1 %v1195_v0 }
 0x16a   :  { %906 = vmatpush3.bf16.msra.mxu1 %v948_v19 }
 0x16b   :  { %911 = vmatprep.subr.bf16.mxu1 %v1195_v0 }
 0x16d   :  { %908 = vmatmul.mubr.msk.bf16.vlgmr.msra.gmra.mrb[8].mxu1 %vm170_vm1, %v949_v20 }
 0x16e   :  { %915 = vmatprep.mubr.msk.bf16.mxu1 %vm1196_vm0, %v1195_v0  ;;  %912 = vmatpush3.bf16.msra.mxu1 %v954_v23 }
 0x16f   :  { %913 = vmatprep.subr.bf16.mxu1 %v1195_v0 }
 0x172   :  { %914 = vmatpush3.bf16.msra.mxu1 %v955_v24 }
 0x238   :  { %v278_v26 = vpop.f32.mrb[4].mxu1 }
 0x239   :  { %v279_v27 = vadd.f32 %v824_v25, %v278_v26  ;;  %v889_v28 = vpop.f32.mrb[5].mxu1 }
 0x23a   :  { %v281_v29 = vpop.f32.mrb[6].mxu1 }
 0x23b   :  { %v282_v30 = vadd.f32 %v824_v25, %v281_v29  ;;  %v890_v31 = vpop.f32.mrb[7].mxu1  ;;  %v285_v32 = vmax.f32 %v279_v27, 0.0 }
 0x23d   :  { %v286_v33 = vmax.f32 %v282_v30, 0.0 }
 0x23f   :  { %v287_v35 = vpack.c.bf16 %v286_v33, %v285_v32 }
 0x240   :  { %v471_v36 = vpop.f32.mrb[8].mxu1 }
 0x241   :  { %v472_v37 = vadd.f32 %v834_v34, %v471_v36  ;;  %900 = vmatmul.mubr.msk.bf16.vlgmr.msra.gmra.mrb[0].mxu0 %vm327_vm2, %v287_v35  ;;  %v909_v38 = vpop.f32.mrb[9].mxu1 }
 0x242   :  { %v474_v39 = vpop.f32.mrb[10].mxu1  ;;  %927 = vmatprep.mubr.msk.bf16.mxu0 %vm1196_vm0, %v1195_v0  ;;  %920 = vmatpush3.bf16.msra.mxu0 %v956_v45 }
 0x243   :  { %v475_v40 = vadd.f32 %v834_v34, %v474_v39  ;;  %v910_v41 = vpop.f32.mrb[11].mxu1  ;;  %v478_v42 = vmax.f32 %v472_v37, 0.0  ;;  %921 = vmatprep.subr.bf16.mxu0 %v1195_v0 }
 0x245   :  { %v479_v43 = vmax.f32 %v475_v40, 0.0 }
 0x246   :  { %922 = vmatpush3.bf16.msra.mxu0 %v957_v46 }
 0x247   :  { %v480_v44 = vpack.c.bf16 %v479_v43, %v478_v42  ;;  %923 = vmatprep.subr.bf16.mxu0 %v1195_v0 }
 0x249   :  { %916 = vmatmul.mubr.msk.bf16.vlgmr.msra.gmra.mrb[12].mxu1 %vm170_vm1, %v480_v44 }
 0x24a   :  { %924 = vmatpush3.bf16.msra.mxu0 %v958_v47 }
 0x24b   :  { %925 = vmatprep.subr.bf16.mxu0 %v1195_v0 }
 0x24e   :  { %926 = vmatpush3.bf16.msra.mxu0 %v959_v48 }
 0x314   :  { %v365_v50 = vpop.f32.mrb[0].mxu0 }
 0x315   :  { %v366_v51 = vadd.f32 %v828_v49, %v365_v50  ;;  %v901_v52 = vpop.f32.mrb[1].mxu0 }
 0x316   :  { %v368_v53 = vpop.f32.mrb[2].mxu0 }
 0x317   :  { %v374_v54 = vmin.f32 %v366_v51, 20.0  ;;  %v369_v55 = vadd.f32 %v828_v49, %v368_v53  ;;  %v902_v56 = vpop.f32.mrb[3].mxu0  ;;  %vm372_vm4 = vcmp.gt.f32.partialorder %v366_v51, 20.0 }
 0x319   :  { %v376_v57 = vmul.f32 1.442695, %v374_v54  ;;  %v375_v58 = vmin.f32 %v369_v55, 20.0  ;;  %vm373_vm5 = vcmp.gt.f32.partialorder %v369_v55, 20.0 }
 0x31b   :  { %960 = vpow2.f32 %v376_v57  ;;  %v378_v60 = vmul.f32 1.442695, %v375_v58 }
 0x31c   :  { %v541_v61 = vpop.f32.mrb[12].mxu1 }
 0x31d   :  { %962 = vpow2.f32 %v378_v60  ;;  %v542_v62 = vadd.f32 %v839_v59, %v541_v61  ;;  %v917_v63 = vpop.f32.mrb[13].mxu1 }
 0x31e   :  { %v544_v0 = vpop.f32.mrb[14].mxu1 }
 0x31f   :  { %v545_v1 = vadd.f32 %v839_v59, %v544_v0  ;;  %v918_v2 = vpop.f32.mrb[15].mxu1  ;;  %v548_v3 = vmax.f32 %v542_v62, 0.0 }
 0x321   :  { %v549_v4 = vmax.f32 %v545_v1, 0.0 }
 0x323   :  { %v550_v5 = vpack.c.bf16 %v549_v4, %v548_v3 }
 0x325   :  { %v961_v6 = vpop.eup %960  ;;  %928 = vmatmul.mubr.msk.bf16.vlgmr.msra.gmra.mrb[4].mxu0 %vm327_vm2, %v550_v5 }
 0x326   :  { %v380_v7 = vadd.f32 1.0, %v961_v6 }
 0x327   :  { %v963_v8 = vpop.eup %962 }
 0x328   :  { %964 = vlog2.f32 %v380_v7  ;;  %v381_v9 = vadd.f32 1.0, %v963_v8 }
 0x32a   :  { %966 = vlog2.f32 %v381_v9 }
 0x332   :  { %v965_v12 = vpop.eup %964 }
 0x333   :  { %v383_v13 = vmul.f32 0.6931472, %v965_v12 }
 0x334   :  { %v967_v14 = vpop.eup %966 }
 0x335   :  { %v386_v15 = vsel %vm372_vm4, %v366_v51, %v383_v13  ;;  %v385_v16 = vmul.f32 0.6931472, %v967_v14 }
 0x336   :  { %v1461_v17 = vsel %vm139_vm3, %v386_v15, 0.0 }
 0x337   :  { %392 = vadd.xlane.f32.xlu0 %v1461_v17  ;;  %390 = vst [vmem:[%s1528_s14] sm:$0xff] %v1461_v17  ;;  %v387_v18 = vsel %vm373_vm5, %v369_v55, %v385_v16  ;;  %v398_v20 = vmul.f32 %v1461_v17, %v1461_v17 }
 0x338   :  { %v1469_v19 = vsel %vm139_vm3, %v387_v18, 0.0 }
 0x339   :  { %391 = vst [vmem:[%s1528_s14 + $0x8] sm:$0xff] %v1469_v19  ;;  %v399_v46 = vmul.f32 %v1469_v19, %v1469_v19 }
 0x33b   :  { %394 = vadd.xlane.f32.xlu0 %v1469_v19 }
 0x33f   :  { %400 = vadd.xlane.f32.xlu0 %v398_v20 }
 0x3c4   :  { %v393_v49 = vpop.xlane.xlu0 %392 }
 0x3c5   :  { %v396_v50 = vadd.f32 8.0, %v393_v49 }
 0x3c8   :  { %v395_v51 = vpop.xlane.xlu0 %394 }
 0x3c9   :  { %v397_v52 = vadd.f32 8.0, %v395_v51 }
 0x3cc   :  { %v401_v55 = vpop.xlane.xlu0 %400 }
 0x3f8   :  { %v627_v22 = vpop.f32.mrb[4].mxu0 }
 0x3f9   :  { %v628_v23 = vadd.f32 %v843_v21, %v627_v22  ;;  %v929_v24 = vpop.f32.mrb[5].mxu0 }
 0x3fa   :  { %v630_v25 = vpop.f32.mrb[6].mxu0 }
 0x3fb   :  { %v636_v26 = vmin.f32 %v628_v23, 20.0  ;;  %v631_v27 = vadd.f32 %v843_v21, %v630_v25  ;;  %v930_v28 = vpop.f32.mrb[7].mxu0  ;;  %vm634_vm6 = vcmp.gt.f32.partialorder %v628_v23, 20.0 }
 0x3fd   :  { %v638_v29 = vmul.f32 1.442695, %v636_v26  ;;  %v637_v30 = vmin.f32 %v631_v27, 20.0  ;;  %vm635_vm7 = vcmp.gt.f32.partialorder %v631_v27, 20.0 }
 0x3ff   :  { %968 = vpow2.f32 %v638_v29  ;;  %v640_v31 = vmul.f32 1.442695, %v637_v30 }
 0x401   :  { %970 = vpow2.f32 %v640_v31 }
 0x409   :  { %v969_v32 = vpop.eup %968 }
 0x40a   :  { %v642_v33 = vadd.f32 1.0, %v969_v32 }
 0x40b   :  { %v971_v34 = vpop.eup %970 }
 0x40c   :  { %972 = vlog2.f32 %v642_v33  ;;  %v643_v35 = vadd.f32 1.0, %v971_v34 }
 0x40e   :  { %974 = vlog2.f32 %v643_v35 }
 0x40f   :  { %976 = vrcp.f32 %v396_v50 }
 0x416   :  { %v973_v36 = vpop.eup %972 }
 0x417   :  { %v645_v37 = vmul.f32 0.6931472, %v973_v36 }
 0x418   :  { %v975_v38 = vpop.eup %974 }
 0x419   :  { %v648_v39 = vsel %vm634_vm6, %v628_v23, %v645_v37  ;;  %v647_v40 = vmul.f32 0.6931472, %v975_v38  ;;  %v977_v60 = vpop.eup %976 }
 0x41a   :  { %v1479_v41 = vsel %vm139_vm3, %v648_v39, 0.0  ;;  %v671_v61 = vmul.f32 %v977_v60, %v977_v60  ;;  %v721_v2 = vmul.f32 8.0, %v977_v60 }
 0x41b   :  { %655 = vadd.xlane.f32.xlu1 %v1479_v41  ;;  %849 = vst [vmem:[%s1528_s14 + $0x10] sm:$0xff] %v1479_v41  ;;  %v661_v42 = vmul.f32 %v1479_v41, %v1479_v41  ;;  %v649_v43 = vsel %vm635_vm7, %v631_v27, %v647_v40  ;;  %v683_v45 = vmul.f32 %v1479_v41, %v1461_v17 }
 0x41c   :  { %v1489_v44 = vsel %vm139_vm3, %v649_v43, 0.0  ;;  %v673_v7 = vmul.f32 %v671_v61, %v401_v55 }
 0x41d   :  { %663 = vadd.xlane.f32.xlu0 %v661_v42  ;;  %850 = vst [vmem:[%s1528_s14 + $0x18] sm:$0xff] %v1489_v44  ;;  %v662_v47 = vmul.f32 %v1489_v44, %v1489_v44  ;;  %v684_v48 = vmul.f32 %v1489_v44, %v1469_v19 }
 0x41f   :  { %657 = vadd.xlane.f32.xlu1 %v1489_v44 }
 0x421   :  { %685 = vadd.xlane.f32.xlu0 %v683_v45 }
 0x423   :  { %402 = vadd.xlane.f32.xlu1 %v399_v46 }
 0x427   :  { %665 = vadd.xlane.f32.xlu1 %v662_v47 }
 0x42b   :  { %687 = vadd.xlane.f32.xlu1 %v684_v48 }
 0x4a8   :  { %v656_v53 = vpop.xlane.xlu1 %655 }
 0x4a9   :  { %v659_v54 = vadd.f32 8.0, %v656_v53 }
 0x4aa   :  { %v664_v58 = vpop.xlane.xlu0 %663 }
 0x4ab   :  { %978 = vrcp.f32 %v659_v54 }
 0x4ac   :  { %980 = vrcp.f32 %v397_v52  ;;  %v658_v56 = vpop.xlane.xlu1 %657 }
 0x4ad   :  { %v660_v57 = vadd.f32 8.0, %v658_v56 }
 0x4ae   :  { %v686_v62 = vpop.xlane.xlu0 %685 }
 0x4af   :  { %982 = vrcp.f32 %v660_v57  ;;  %v691_v6 = vmul.f32 2.0, %v686_v62 }
 0x4b0   :  { %v403_v59 = vpop.xlane.xlu1 %402 }
 0x4b4   :  { %v666_v63 = vpop.xlane.xlu1 %665 }
 0x4b5   :  { %v979_v0 = vpop.eup %978 }
 0x4b6   :  { %v981_v1 = vpop.eup %980  ;;  %v723_v3 = vmul.f32 8.0, %v979_v0  ;;  %v675_v4 = vmul.f32 %v979_v0, %v979_v0  ;;  %v693_v5 = vmul.f32 %v979_v0, %v977_v60 }
 0x4b7   :  { %v722_v12 = vmul.f32 8.0, %v981_v1  ;;  %v672_v13 = vmul.f32 %v981_v1, %v981_v1 }
 0x4b8   :  { %v725_v8 = vadd.f32 %v723_v3, %v721_v2  ;;  %v677_v9 = vmul.f32 %v675_v4, %v664_v58  ;;  %v688_v10 = vpop.xlane.xlu1 %687  ;;  %v695_v14 = vmul.f32 %v693_v5, %v691_v6 }
 0x4b9   :  { %v983_v11 = vpop.eup %982  ;;  %v692_v15 = vmul.f32 2.0, %v688_v10  ;;  %v674_v23 = vmul.f32 %v672_v13, %v403_v59 }
 0x4ba   :  { %984 = vrcp.f32 %v725_v8  ;;  %v689_v16 = vadd.f32 %v677_v9, %v673_v7  ;;  %v724_v18 = vmul.f32 8.0, %v983_v11  ;;  %v676_v20 = vmul.f32 %v983_v11, %v983_v11 }
 0x4bb   :  { %v694_v21 = vmul.f32 %v983_v11, %v981_v1 }
 0x4bc   :  { %v726_v22 = vadd.f32 %v724_v18, %v722_v12  ;;  %v697_v24 = vsub.f32 %v689_v16, %v695_v14  ;;  %v678_v25 = vmul.f32 %v676_v20, %v666_v63 }
 0x4bd   :  { %v696_v28 = vmul.f32 %v694_v21, %v692_v15 }
 0x4be   :  { %986 = vrcp.f32 %v726_v22  ;;  %v699_v26 = vmul.f32 0.5, %v697_v24  ;;  %v690_v27 = vadd.f32 %v678_v25, %v674_v23 }
 0x4c0   :  { %v701_v29 = vmax.f32 %v699_v26, 0.0  ;;  %v698_v30 = vsub.f32 %v690_v27, %v696_v28 }
 0x4c2   :  { %988 = vrsqrt.f32 %v701_v29  ;;  %v700_v31 = vmul.f32 0.5, %v698_v30  ;;  %vm705_vm8 = vcmp.eq.f32.partialorder %v701_v29, inf  ;;  %vm707_vm9 = vcmp.eq.f32.partialorder %v701_v29, 0.0 }
 0x4c3   :  { %v708_v57 = vand.u32 2147483648, %v701_v29 }
 0x4c4   :  { %v985_v32 = vpop.eup %984  ;;  %v702_v35 = vmax.f32 %v700_v31, 0.0 }
 0x4c5   :  { %v729_v33 = vmul.f32 %v985_v32, %v721_v2  ;;  %v731_v34 = vmul.f32 %v985_v32, %v723_v3 }
 0x4c6   :  { %990 = vrsqrt.f32 %v702_v35  ;;  %vm712_vm10 = vcmp.eq.f32.partialorder %v702_v35, inf  ;;  %vm714_vm11 = vcmp.eq.f32.partialorder %v702_v35, 0.0  ;;  %v715_v7 = vand.u32 2147483648, %v702_v35 }
 0x4c7   :  { %v733_v36 = vmax.f32 %v729_v33, %v731_v34  ;;  %v737_v37 = vsub.f32 0.0, %v729_v33  ;;  %v755_v38 = vsub.f32 0.0, %v731_v34 }
 0x4c8   :  { %v987_v39 = vpop.eup %986 }
 0x4c9   :  { %v743_v40 = vadd.f32 1.0, %v733_v36  ;;  %v730_v42 = vmul.f32 %v987_v39, %v722_v12  ;;  %v739_v43 = vmul.f32 1.442695, %v737_v37  ;;  %v732_v45 = vmul.f32 %v987_v39, %v724_v18 }
 0x4ca   :  { %v757_v47 = vmul.f32 1.442695, %v755_v38 }
 0x4cb   :  { %v745_v46 = vsub.f32 %v743_v40, %v729_v33  ;;  %v761_v48 = vsub.f32 %v743_v40, %v731_v34  ;;  %v734_v50 = vmax.f32 %v730_v42, %v732_v45  ;;  %v738_v51 = vsub.f32 0.0, %v730_v42 }
 0x4cc   :  { %v989_v49 = vpop.eup %988  ;;  %v756_v54 = vsub.f32 0.0, %v732_v45  ;;  %992 = vpow2.f32 %v739_v43 }
 0x4cd   :  { %v747_v52 = vsub.f32 0.0, %v745_v46  ;;  %v763_v53 = vsub.f32 0.0, %v761_v48  ;;  %v704_v55 = vmul.f32 %v989_v49, %v701_v29  ;;  %v744_v56 = vadd.f32 1.0, %v734_v50 }
 0x4ce   :  { %994 = vpow2.f32 %v757_v47  ;;  %v741_v61 = vmul.f32 1.442695, %v738_v51  ;;  %v759_v2 = vmul.f32 1.442695, %v756_v54 }
 0x4cf   :  { %v749_v58 = vmul.f32 1.442695, %v747_v52  ;;  %v765_v59 = vmul.f32 1.442695, %v763_v53  ;;  %v706_v60 = vsel %vm705_vm8, %v701_v29, %v704_v55  ;;  %v746_v62 = vsub.f32 %v744_v56, %v730_v42 }
 0x4d0   :  { %v762_v63 = vsub.f32 %v744_v56, %v732_v45  ;;  %v709_v0 = vsel %vm707_vm9, %v708_v57, %v706_v60  ;;  %v991_v1 = vpop.eup %990 }
 0x4d1   :  { %996 = vpow2.f32 %v749_v58  ;;  %v748_v3 = vsub.f32 0.0, %v746_v62  ;;  %v711_v5 = vmul.f32 %v991_v1, %v702_v35  ;;  %v717_v6 = vadd.f32 %v709_v0, %v709_v0 }
 0x4d2   :  { %998 = vpow2.f32 %v765_v59  ;;  %v764_v4 = vsub.f32 0.0, %v762_v63 }
 0x4d3   :  { %1000 = vpow2.f32 %v741_v61  ;;  %v751_v8 = vmul.f32 1.442695, %v748_v3  ;;  %v713_v10 = vsel %vm712_vm10, %v702_v35, %v711_v5  ;;  %v719_v12 = vmul.f32 0.5, %v717_v6 }
 0x4d4   :  { %v767_v9 = vmul.f32 1.442695, %v764_v4  ;;  %1002 = vpow2.f32 %v759_v2  ;;  %v716_v11 = vsel %vm714_vm11, %v715_v7, %v713_v10 }
 0x4d5   :  { %1004 = vpow2.f32 %v751_v8  ;;  %v718_v14 = vadd.f32 %v716_v11, %v716_v11  ;;  %vm735_vm12 = vcmp.lt.f32.partialorder %v709_v0, %v719_v12 }
 0x4d6   :  { %1006 = vpow2.f32 %v767_v9  ;;  %v993_v13 = vpop.eup %992 }
 0x4d7   :  { %v720_v21 = vmul.f32 0.5, %v718_v14 }
 0x4d8   :  { %v995_v15 = vpop.eup %994 }
 0x4d9   :  { %vm736_vm13 = vcmp.lt.f32.partialorder %v716_v11, %v720_v21 }
 0x4db   :  { %v997_v16 = vpop.eup %996 }
 0x4dc   :  { %v999_v18 = vpop.eup %998  ;;  %v753_v20 = vsel %vm735_vm12, %v993_v13, %v997_v16 }
 0x4dd   :  { %v769_v22 = vsel %vm735_vm12, %v995_v15, %v999_v18  ;;  %v1001_v23 = vpop.eup %1000 }
 0x4de   :  { %v771_v24 = vadd.f32 %v769_v22, %v753_v20  ;;  %v1003_v25 = vpop.eup %1002 }
 0x4df   :  { %v1005_v26 = vpop.eup %1004 }
 0x4e0   :  { %1008 = vrcp.f32 %v771_v24  ;;  %v1007_v27 = vpop.eup %1006  ;;  %v754_v28 = vsel %vm736_vm13, %v1001_v23, %v1005_v26 }
 0x4e1   :  { %v770_v29 = vsel %vm736_vm13, %v1003_v25, %v1007_v27 }
 0x4e2   :  { %v772_v30 = vadd.f32 %v770_v29, %v754_v28 }
 0x4e4   :  { %1010 = vrcp.f32 %v772_v30 }
 0x4ea   :  { %v1009_v31 = vpop.eup %1008 }
 0x4eb   :  { %v775_v32 = vmul.f32 %v1009_v31, %v753_v20  ;;  %v777_v33 = vmul.f32 %v1009_v31, %v769_v22 }
 0x4ed   :  { %v779_v34 = vmul.f32 2.0, %v775_v32  ;;  %v785_v35 = vmul.f32 2.0, %v777_v33 }
 0x4ee   :  { %v1011_v36 = vpop.eup %1010 }
 0x4ef   :  { %v781_v37 = vmul.f32 1.442695, %v779_v34  ;;  %v787_v38 = vmul.f32 1.442695, %v785_v35  ;;  %v776_v39 = vmul.f32 %v1011_v36, %v754_v28  ;;  %v778_v40 = vmul.f32 %v1011_v36, %v770_v29 }
 0x4f1   :  { %1012 = vpow2.f32 %v781_v37  ;;  %v780_v42 = vmul.f32 2.0, %v776_v39  ;;  %v786_v43 = vmul.f32 2.0, %v778_v40 }
 0x4f2   :  { %1014 = vpow2.f32 %v787_v38 }
 0x4f3   :  { %v783_v45 = vmul.f32 1.442695, %v780_v42  ;;  %v789_v46 = vmul.f32 1.442695, %v786_v43 }
 0x4f5   :  { %1016 = vpow2.f32 %v783_v45 }
 0x4f6   :  { %1018 = vpow2.f32 %v789_v46 }
 0x4fb   :  { %v1013_v47 = vpop.eup %1012 }
 0x4fc   :  { %v1015_v48 = vpop.eup %1014 }
 0x4fd   :  { %v791_v49 = vadd.f32 %v1015_v48, %v1013_v47 }
 0x4ff   :  { %1020 = vrcp.f32 %v791_v49  ;;  %v1017_v50 = vpop.eup %1016 }
 0x500   :  { %v1019_v51 = vpop.eup %1018 }
 0x501   :  { %v792_v52 = vadd.f32 %v1019_v51, %v1017_v50 }
 0x503   :  { %1022 = vrcp.f32 %v792_v52 }
 0x509   :  { %v1021_v53 = vpop.eup %1020 }
 0x50a   :  { %v794_v54 = vmul.f32 %v1021_v53, %v1013_v47  ;;  %v797_v55 = vmul.f32 %v1021_v53, %v1015_v48 }
 0x50c   :  { %v799_v56 = vmul.f32 %v794_v54, %v1461_v17  ;;  %v801_v57 = vmul.f32 %v797_v55, %v1479_v41 }
 0x50d   :  { %v1023_v58 = vpop.eup %1022 }
 0x50e   :  { %v803_v59 = vadd.f32 %v801_v57, %v799_v56  ;;  %v796_v60 = vmul.f32 %v1023_v58, %v1017_v50  ;;  %v798_v61 = vmul.f32 %v1023_v58, %v1019_v51 }
 0x510   :  { %805 = vst [vmem:[%s1529_s15] sm:$0xff] %v803_v59  ;;  %v800_v62 = vmul.f32 %v796_v60, %v1469_v19  ;;  %v802_v63 = vmul.f32 %v798_v61, %v1489_v44 }
 0x512   :  { %v804_v0 = vadd.f32 %v802_v63, %v800_v62 }
 0x514   :  { %806 = vst [vmem:[%s1529_s15 + $0x8] sm:$0xff] %v804_v0 }
 0x515   :  { %815 = vsyncpa [#allocation3], 1 }
 0x516   :  { %816 = vsyncpa [#allocation5], 1 }
 0x517   :  { %817 = vsyncpa [#allocation8], 1 }
 0x518   :  { %818 = vsyncpa [#allocation11], 1 }

</bundles_post_ra>
